<compile_context>
chip_gen: v5e
topology: v5e:2x2
jax: 0.10.0
libtpu: 0.0.40
codegen_flags: <defaults>
</compile_context>

<pallas_src>
import functools
import math

import jax
import jax.numpy as jnp
from jax.experimental import pallas as pl
from jax.experimental.pallas import tpu as pltpu


def _graph_mlp_kernel(x_ref, w1_ref, b1_ref, w2_ref, b2_ref, o_ref):
    """One row tile: h = relu(x @ W1 + b1); out = h + (h @ W2 + b2)."""
    x = x_ref[...]                                              # (tm, Din)
    # fc1 on the MXU: bf16 operands, f32 accumulation.
    h = jnp.dot(x.astype(jnp.bfloat16), w1_ref[...],
                preferred_element_type=jnp.float32)
    h = jnp.maximum(h + b1_ref[...], 0.0)                       # ReLU in f32
    # Dropout(p=0.2) is identity at inference time.
    # TODO(synk): training-mode dropout (pltpu.prng_* Bernoulli mask) not implemented.
    y = jnp.dot(h.astype(jnp.bfloat16), w2_ref[...],
                preferred_element_type=jnp.float32)
    y = y + b2_ref[...]
    o_ref[...] = (h + y).astype(o_ref.dtype)                    # residual: h + fc2(h)


@functools.partial(jax.jit, static_argnames=("tm",))
def graph_mlp_forward(x, w1, b1, w2, b2, *, tm=512):
    """GraphMLP forward (eval mode).

    Args:
      x:  [..., Din]  (nn.Linear is channels-last -> no layout transposes).
      w1: [Dh, Din] fc1 weight, b1: [Dh] fc1 bias.
      w2: [Dh, Dh]  fc2 weight, b2: [Dh] fc2 bias.
    Returns:
      [..., Dh]
    """
    *lead, Din = x.shape
    Dh = w1.shape[0]
    M = math.prod(lead)
    x2d = x.reshape(M, Din)                        # free reshape, no HBM transpose

    # nn.Linear weights -> (in, out) matmul operands, streamed as bf16.
    w1t = jnp.transpose(w1).astype(jnp.bfloat16)   # (Din, Dh)
    w2t = jnp.transpose(w2).astype(jnp.bfloat16)   # (Dh, Dh)
    b1r = b1.reshape(1, Dh).astype(jnp.float32)
    b2r = b2.reshape(1, Dh).astype(jnp.float32)

    # Large row tile + cdiv grid (no tm=M fallback that could blow VMEM).
    if M <= tm:
        tm_eff = M                                 # single block == full extent (always legal)
    else:
        tm_eff = tm                                # 512: multiple of 8, ~85% of HBM roofline
    grid = (pl.cdiv(M, tm_eff),)

    flops = 2 * M * Din * Dh + 2 * M * Dh * Dh
    bytes_accessed = (x2d.size * x2d.dtype.itemsize     # x read
                      + M * Dh * 4                      # output write
                      + w1t.size * 2 + w2t.size * 2     # bf16 weights
                      + (b1r.size + b2r.size) * 4)      # biases

    out2d = pl.pallas_call(
        _graph_mlp_kernel,
        out_shape=jax.ShapeDtypeStruct((M, Dh), x.dtype),
        grid_spec=pltpu.PrefetchScalarGridSpec(
            num_scalar_prefetch=0,
            grid=grid,
            in_specs=[
                pl.BlockSpec((tm_eff, Din), lambda i: (i, 0)),   # x row tile
                pl.BlockSpec((Din, Dh),     lambda i: (0, 0)),   # W1^T (resident)
                pl.BlockSpec((1, Dh),       lambda i: (0, 0)),   # b1
                pl.BlockSpec((Dh, Dh),      lambda i: (0, 0)),   # W2^T (resident)
                pl.BlockSpec((1, Dh),       lambda i: (0, 0)),   # b2
            ],
            out_specs=pl.BlockSpec((tm_eff, Dh), lambda i: (i, 0)),
        ),
        compiler_params=pltpu.CompilerParams(
            dimension_semantics=("parallel",)),    # shards row tiles across v7x's 2 TCs
        cost_estimate=pl.CostEstimate(
            flops=flops, transcendentals=0, bytes_accessed=bytes_accessed),
    )(x2d, w1t, b1r, w2t, b2r)

    return out2d.reshape(*lead, Dh)


def _reference_f32(x, w1, b1, w2, b2):
    """Pure-JAX f32 reference (matches PyTorch eval-mode forward)."""
    h = jnp.maximum(x @ w1.T + b1, 0.0)
    return h + (h @ w2.T + b2)


def _reference_mixed(x, w1, b1, w2, b2):
    """Reference mirroring the kernel's bf16-operand / f32-accumulate matmuls."""
    lead = x.shape[:-1]
    x2d = x.reshape(-1, x.shape[-1])
    h = jnp.dot(x2d.astype(jnp.bfloat16), w1.T.astype(jnp.bfloat16),
                preferred_element_type=jnp.float32) + b1
    h = jnp.maximum(h, 0.0)
    y = jnp.dot(h.astype(jnp.bfloat16), w2.T.astype(jnp.bfloat16),
                preferred_element_type=jnp.float32) + b2
    return (h + y).reshape(*lead, -1)


if __name__ == "__main__":
    key = jax.random.PRNGKey(0)
    k_x, k_w1, k_b1, k_w2, k_b2 = jax.random.split(key, 5)

    # Small graph batch: [B, N, input_dim], hidden_dim != input_dim to show generality.
    B, N, Din, Dh = 4, 256, 32, 64
    x = jax.random.normal(k_x, (B, N, Din), dtype=jnp.float32)

    # Deterministic synthetic nn.Linear parameters.
    w1 = jax.random.normal(k_w1, (Dh, Din), dtype=jnp.float32) * 0.1
    b1 = jax.random.normal(k_b1, (Dh,), dtype=jnp.float32) * 0.1
    w2 = jax.random.normal(k_w2, (Dh, Dh), dtype=jnp.float32) * 0.1
    b2 = jax.random.normal(k_b2, (Dh,), dtype=jnp.float32) * 0.1

    out = graph_mlp_forward(x, w1, b1, w2, b2)
    out = jax.block_until_ready(out)
    assert out.shape == (B, N, Dh), out.shape

    ref_mixed = _reference_mixed(x, w1, b1, w2, b2)
    assert jnp.allclose(out, ref_mixed, atol=1e-3, rtol=1e-3), \
        "mismatch vs precision-matched reference"

    ref_f32 = _reference_f32(x, w1, b1, w2, b2)
    assert jnp.allclose(out, ref_f32, atol=5e-2, rtol=5e-2), \
        "mismatch vs f32 reference"

    print("KERNEL_OK")
</pallas_src>

<mosaic_0001>
module attributes {stable_mosaic.version = 11 : i64} {
  func.func @_graph_mlp_kernel(%arg0: i32, %arg1: memref<512x32xf32, #tpu.memory_space<vmem>>, %arg2: memref<32x64xbf16, #tpu.memory_space<vmem>>, %arg3: memref<1x64xf32, #tpu.memory_space<vmem>>, %arg4: memref<64x64xbf16, #tpu.memory_space<vmem>>, %arg5: memref<1x64xf32, #tpu.memory_space<vmem>>, %arg6: memref<512x64xf32, #tpu.memory_space<vmem>>) attributes {dimension_semantics = [#tpu.dimension_semantics<parallel>], iteration_bounds = array<i64: 2>, scalar_prefetch = 0 : i64, scratch_operands = 0 : i64, tpu.core_type = #tpu.core_type<tc>, window_params = [{transform_indices = @transform_0, window_bounds = array<i64: 512, 32>}, {pipeline_mode = #tpu.pipeline_mode<synchronous>, transform_indices = @transform_1, window_bounds = array<i64: 32, 64>}, {pipeline_mode = #tpu.pipeline_mode<synchronous>, transform_indices = @transform_2, window_bounds = array<i64: 1, 64>}, {pipeline_mode = #tpu.pipeline_mode<synchronous>, transform_indices = @transform_3, window_bounds = array<i64: 64, 64>}, {pipeline_mode = #tpu.pipeline_mode<synchronous>, transform_indices = @transform_4, window_bounds = array<i64: 1, 64>}, {transform_indices = @transform_5, window_bounds = array<i64: 512, 64>}]} {
    %c0 = arith.constant 0 : index
    %c0_0 = arith.constant 0 : index
    %0 = vector.load %arg1[%c0, %c0_0] : memref<512x32xf32, #tpu.memory_space<vmem>>, vector<512x32xf32>
    %1 = arith.truncf %0 : vector<512x32xf32> to vector<512x32xbf16>
    %c0_1 = arith.constant 0 : index
    %c0_2 = arith.constant 0 : index
    %2 = vector.load %arg2[%c0_1, %c0_2] : memref<32x64xbf16, #tpu.memory_space<vmem>>, vector<32x64xbf16>
    %cst = arith.constant dense<0.000000e+00> : vector<512x64xf32>
    %3 = tpu.matmul %1, %2, %cst {dimension_numbers = #tpu.dot_dimension_numbers<[1], [0], [0], [1], [0, 0, 1, 1], [], []>} : vector<512x32xbf16>, vector<32x64xbf16>, vector<512x64xf32> -> vector<512x64xf32>
    %c0_3 = arith.constant 0 : index
    %c0_4 = arith.constant 0 : index
    %4 = vector.load %arg3[%c0_3, %c0_4] : memref<1x64xf32, #tpu.memory_space<vmem>>, vector<1x64xf32>
    %5 = vector.broadcast %4 : vector<1x64xf32> to vector<512x64xf32>
    %6 = arith.addf %3, %5 : vector<512x64xf32>
    %cst_5 = arith.constant 0.000000e+00 : f32
    %7 = vector.broadcast %cst_5 : f32 to vector<512x64xf32>
    %8 = arith.maximumf %6, %7 : vector<512x64xf32>
    %9 = arith.truncf %8 : vector<512x64xf32> to vector<512x64xbf16>
    %c0_6 = arith.constant 0 : index
    %c0_7 = arith.constant 0 : index
    %10 = vector.load %arg4[%c0_6, %c0_7] : memref<64x64xbf16, #tpu.memory_space<vmem>>, vector<64x64xbf16>
    %cst_8 = arith.constant dense<0.000000e+00> : vector<512x64xf32>
    %11 = tpu.matmul %9, %10, %cst_8 {dimension_numbers = #tpu.dot_dimension_numbers<[1], [0], [0], [1], [0, 0, 1, 1], [], []>} : vector<512x64xbf16>, vector<64x64xbf16>, vector<512x64xf32> -> vector<512x64xf32>
    %c0_9 = arith.constant 0 : index
    %c0_10 = arith.constant 0 : index
    %12 = vector.load %arg5[%c0_9, %c0_10] : memref<1x64xf32, #tpu.memory_space<vmem>>, vector<1x64xf32>
    %13 = vector.broadcast %12 : vector<1x64xf32> to vector<512x64xf32>
    %14 = arith.addf %11, %13 : vector<512x64xf32>
    %15 = arith.addf %8, %14 : vector<512x64xf32>
    %c0_11 = arith.constant 0 : index
    %c0_12 = arith.constant 0 : index
    %16 = vector.load %arg6[%c0_11, %c0_12] : memref<512x64xf32, #tpu.memory_space<vmem>>, vector<512x64xf32>
    tpu.vector_store %arg6[%c0_11, %c0_12], %15 {strides = array<i32>} : memref<512x64xf32, #tpu.memory_space<vmem>>, vector<512x64xf32>,
    return
  }
  func.func @transform_0(%arg0: i32) -> (i32, i32) {
    %c0_i32 = arith.constant 0 : i32
    %c0_i32_0 = arith.constant 0 : i32
    return %arg0, %c0_i32 : i32, i32
  }
  func.func @transform_1(%arg0: i32) -> (i32, i32) {
    %c0_i32 = arith.constant 0 : i32
    %c0_i32_0 = arith.constant 0 : i32
    %c0_i32_1 = arith.constant 0 : i32
    return %c0_i32, %c0_i32_0 : i32, i32
  }
  func.func @transform_2(%arg0: i32) -> (i32, i32) {
    %c0_i32 = arith.constant 0 : i32
    %c0_i32_0 = arith.constant 0 : i32
    %c0_i32_1 = arith.constant 0 : i32
    return %c0_i32, %c0_i32_0 : i32, i32
  }
  func.func @transform_3(%arg0: i32) -> (i32, i32) {
    %c0_i32 = arith.constant 0 : i32
    %c0_i32_0 = arith.constant 0 : i32
    %c0_i32_1 = arith.constant 0 : i32
    return %c0_i32, %c0_i32_0 : i32, i32
  }
  func.func @transform_4(%arg0: i32) -> (i32, i32) {
    %c0_i32 = arith.constant 0 : i32
    %c0_i32_0 = arith.constant 0 : i32
    %c0_i32_1 = arith.constant 0 : i32
    return %c0_i32, %c0_i32_0 : i32, i32
  }
  func.func @transform_5(%arg0: i32) -> (i32, i32) {
    %c0_i32 = arith.constant 0 : i32
    %c0_i32_0 = arith.constant 0 : i32
    return %arg0, %c0_i32 : i32, i32
  }
}

</mosaic_0001>

<bundles_post_ra>
// kernel: graph_mlp_forward.1
= control target key start
LH: loop header
LB: loop body
LE: loop exit
PB: predicated region body
PF: predicated region fallthrough
CT: control target
= control target key end

     0   :  { %s1353_s18 = smov 0   ;;  %s2242_s0 = inlined_call_operand.vmem [shape: f32[1024,32], index: 0, kind: input, shape index: {}]   ;;  %s2243_s1 = inlined_call_operand.vmem [shape: bf16[32,64], index: 1, kind: input, shape index: {}]   ;;  %s2244_s2 = inlined_call_operand.vmem [shape: f32[1,64], index: 2, kind: input, shape index: {}]   ;;  %s2245_s3 = inlined_call_operand.vmem [shape: bf16[64,64], index: 3, kind: input, shape index: {}]   ;;  %s2246_s4 = inlined_call_operand.vmem [shape: f32[1,64], index: 4, kind: input, shape index: {}]   ;;  %s2247_s5 = inlined_call_operand.vmem [shape: f32[1024,64], index: 5, kind: output, shape index: {}]  }
   0x1 LB: > { %s1193_s19 = sadd.s32 4294967295, %s1321_s18   ;;  %p1197_p0 = scmp.ge.s32.totalorder %s1321_s18, 1  ;;  %s1321_s18 = sphi %s1353_s18, %s15_s18  }
   0x2   : > { %p188_p1 = scmp.lt.s32.totalorder %s1321_s18, 3 }
   0x4   : > { %p189_p2 = pnand %p1197_p0, %p188_p1 }
   0x5   : > { %s1198_s22 = sshll.u32 (!%p189_p2), %s1193_s19, 6 }
   0x6   : > { %192 = sbr.rel (%p189_p2) target bundleno = 800 (0x320), region = 40  ;;  %p217_p3 = scmp.lt.s32.totalorder (!%p189_p2), %s1198_s22, 127 }
   0xb   : > { %v1293_v0 = vld [vmem:[%s2243_s1 + $0x8] sm:$0xff]  ;;  %v1292_v1 = vld [vmem:[%s2243_s1] sm:$0xff]  ;;  %s2249_s22 = smov (!%p217_p3, %s1198_s22), 127  ;;  %vm345_vm0 = vcmask 261120   ;;  %v1297_v22 = vld [vmem:[%s2245_s3 + $0x18] sm:$0xff]  ;;  %vm743_vm1 = vcmask 523264  }
   0xc   : > { %448 = vmatpush.bf16.msra.mxu0 %v1293_v0  ;;  %1298 = vmatpush.bf16.msra.mxu3 %v1293_v0  ;;  %s1199_s25 = sshll.u32 %s2249_s22, 3  ;;  %v1296_v24 = vld [vmem:[%s2245_s3 + $0x10] sm:$0xff]  ;;  %v1295_v25 = vld [vmem:[%s2245_s3 + $0x8] sm:$0xff]  ;;  %v1294_v26 = vld [vmem:[%s2245_s3] sm:$0xff] }
   0xd   : > { %s1375_s28 = scalar_lea.vmem %s2242_s0, %s1199_s25  ;;  %844 = vmatpush.bf16.msra.mxu1 %v1297_v22  ;;  %1300 = vmatpush.bf16.msra.mxu2 %v1297_v22  ;;  %v1418_v34 = vld [vmem:[%s2244_s2] ss:$0 sm:$0xff]  ;;  %s1581_s19 = scalar_lea.vmem %s2247_s5, %s1199_s25 }
   0xe   : > { %v229_v2 = vld [vmem:[%s1375_s28] sm:$0xff]  ;;  %v230_v3 = vld [vmem:[%s1375_s28 + $0x8] sm:$0xff]  ;;  %v231_v5 = vld [vmem:[%s1375_s28 + $0x10] sm:$0xff] }
   0xf   : > { %v293_v4 = vpack.c.bf16 %v230_v3, %v229_v2  ;;  %v232_v6 = vld [vmem:[%s1375_s28 + $0x18] sm:$0xff]  ;;  %v233_v8 = vld [vmem:[%s1375_s28 + $0x20] sm:$0xff]  ;;  %v234_v9 = vld [vmem:[%s1375_s28 + $0x28] sm:$0xff] }
  0x10   : > { %449 = vmatpush.bf16.msra.mxu0 %v1292_v1  ;;  %1299 = vmatpush.bf16.msra.mxu3 %v1292_v1  ;;  %v294_v7 = vpack.c.bf16 %v232_v6, %v231_v5  ;;  %v295_v10 = vpack.c.bf16 %v234_v9, %v233_v8  ;;  %v235_v11 = vld [vmem:[%s1375_s28 + $0x30] sm:$0xff]  ;;  %v236_v12 = vld [vmem:[%s1375_s28 + $0x38] sm:$0xff]  ;;  %v237_v14 = vld [vmem:[%s1375_s28 + $0x40] sm:$0xff] }
  0x11   : > { %v296_v13 = vpack.c.bf16 %v236_v12, %v235_v11  ;;  %v238_v15 = vld [vmem:[%s1375_s28 + $0x48] sm:$0xff]  ;;  %v239_v17 = vld [vmem:[%s1375_s28 + $0x50] sm:$0xff]  ;;  %v240_v18 = vld [vmem:[%s1375_s28 + $0x58] sm:$0xff]  ;;  %845 = vmatpush.bf16.msra.mxu1 %v1296_v24  ;;  %1301 = vmatpush.bf16.msra.mxu2 %v1296_v24 }
  0x12   : > { %v297_v16 = vpack.c.bf16 %v238_v15, %v237_v14  ;;  %v298_v19 = vpack.c.bf16 %v240_v18, %v239_v17  ;;  %v241_v20 = vld [vmem:[%s1375_s28 + $0x60] sm:$0xff]  ;;  %v242_v21 = vld [vmem:[%s1375_s28 + $0x68] sm:$0xff]  ;;  %v243_v27 = vld [vmem:[%s1375_s28 + $0x70] sm:$0xff] }
  0x13   : > { %1210 = vmatmul.msk.bf16.vlgmr.msra.gmra.mxu0 %vm345_vm0, %v293_v4  ;;  %v299_v23 = vpack.c.bf16 %v242_v21, %v241_v20  ;;  %v244_v28 = vld [vmem:[%s1375_s28 + $0x78] sm:$0xff]  ;;  %v245_v30 = vld [vmem:[%s1375_s28 + $0x80] sm:$0xff]  ;;  %v246_v31 = vld [vmem:[%s1375_s28 + $0x88] sm:$0xff] }
  0x14   : > { %v300_v29 = vpack.c.bf16 %v244_v28, %v243_v27  ;;  %v301_v32 = vpack.c.bf16 %v246_v31, %v245_v30  ;;  %v247_v40 = vld [vmem:[%s1375_s28 + $0x90] sm:$0xff]  ;;  %v248_v41 = vld [vmem:[%s1375_s28 + $0x98] sm:$0xff]  ;;  %v249_v50 = vld [vmem:[%s1375_s28 + $0xa0] sm:$0xff] }
  0x15   : > { %846 = vmatpush.bf16.msra.mxu1 %v1295_v25  ;;  %1302 = vmatpush.bf16.msra.mxu2 %v1295_v25  ;;  %v302_v43 = vpack.c.bf16 %v248_v41, %v247_v40  ;;  %v250_v51 = vld [vmem:[%s1375_s28 + $0xa8] sm:$0xff]  ;;  %v251_v60 = vld [vmem:[%s1375_s28 + $0xb0] sm:$0xff]  ;;  %v252_v61 = vld [vmem:[%s1375_s28 + $0xb8] sm:$0xff] }
  0x16   : > { %v303_v53 = vpack.c.bf16 %v250_v51, %v249_v50  ;;  %v304_v63 = vpack.c.bf16 %v252_v61, %v251_v60  ;;  %v253_v6 = vld [vmem:[%s1375_s28 + $0xc0] sm:$0xff]  ;;  %v256_v17 = vld [vmem:[%s1375_s28 + $0xd8] sm:$0xff]  ;;  %v258_v27 = vld [vmem:[%s1375_s28 + $0xe8] sm:$0xff] }
  0x17   : > { %v263_v31 = vld [vmem:[%s1375_s28 + $0x110] sm:$0xff] }
  0x19   : > { %847 = vmatpush.bf16.msra.mxu1 %v1294_v26  ;;  %1303 = vmatpush.bf16.msra.mxu2 %v1294_v26  ;;  %v257_v26 = vld [vmem:[%s1375_s28 + $0xe0] sm:$0xff] }
  0x23   : > { %1211 = vmatmul.msk.bf16.gmra.mxu0 %vm345_vm0, %v294_v7  ;;  %v254_v7 = vld [vmem:[%s1375_s28 + $0xc8] sm:$0xff] }
  0x24   : > { %v305_v9 = vpack.c.bf16 %v254_v7, %v253_v6  ;;  %v262_v6 = vld [vmem:[%s1375_s28 + $0x108] sm:$0xff] }
  0x33   : > { %1212 = vmatmul.msk.bf16.gmra.mxu0 %vm345_vm0, %v295_v10 }
  0x43   : > { %1213 = vmatmul.msk.bf16.gmra.mxu0 %vm345_vm0, %v296_v13 }
  0x53   : > { %1214 = vmatmul.msk.bf16.gmra.mxu0 %vm345_vm0, %v297_v16  ;;  %v255_v16 = vld [vmem:[%s1375_s28 + $0xd0] sm:$0xff] }
  0x63   : > { %1215 = vmatmul.msk.bf16.gmra.mxu0 %vm345_vm0, %v298_v19  ;;  %v306_v19 = vpack.c.bf16 %v256_v17, %v255_v16 }
  0x73   : > { %1216 = vmatmul.msk.bf16.gmra.mxu0 %vm345_vm0, %v299_v23 }
  0x83   : > { %1217 = vmatmul.msk.bf16.gmra.mxu0 %vm345_vm0, %v300_v29  ;;  %v307_v29 = vpack.c.bf16 %v258_v27, %v257_v26 }
  0x90   : > { %v451_v33 = vpop.f32.mrf.mxu0 }
  0x91   : > { %v1422_v35 = vadd.f32 %v1418_v34, %v451_v33 }
  0x93   : > { %1218 = vmatmul.msk.bf16.gmra.mxu0 %vm345_vm0, %v301_v32  ;;  %v611_v38 = vmax.f32 %v1422_v35, 0.0  ;;  %v264_v32 = vld [vmem:[%s1375_s28 + $0x118] sm:$0xff] }
  0x94   : > { %v310_v33 = vpack.c.bf16 %v264_v32, %v263_v31  ;;  %v269_v32 = vld [vmem:[%s1375_s28 + $0x140] sm:$0xff] }
  0x96   : > { %1227 = vmatmul.msk.bf16.vlgmr.msra.gmra.mxu3 %vm345_vm0, %v310_v33  ;;  %v270_v33 = vld [vmem:[%s1375_s28 + $0x148] sm:$0xff] }
  0x98   : > { %v453_v36 = vpop.f32.mrf.mxu0 }
  0x99   : > { %v1425_v37 = vadd.f32 %v1418_v34, %v453_v36 }
  0x9b   : > { %v612_v39 = vmax.f32 %v1425_v37, 0.0 }
  0x9d   : > { %v675_v42 = vpack.c.bf16 %v612_v39, %v611_v38 }
  0x9f   : > { %1258 = vmatmul.msk.bf16.vlgmr.msra.gmra.mxu1 %vm743_vm1, %v675_v42 }
  0xa0   : > { %v456_v44 = vpop.f32.mrf.mxu0 }
  0xa1   : > { %v1438_v45 = vadd.f32 %v1418_v34, %v456_v44  ;;  %v259_v44 = vld [vmem:[%s1375_s28 + $0xf0] sm:$0xff] }
  0xa3   : > { %1219 = vmatmul.msk.bf16.gmra.mxu0 %vm345_vm0, %v302_v43  ;;  %v613_v48 = vmax.f32 %v1438_v45, 0.0 }
  0xa8   : > { %v458_v46 = vpop.f32.mrf.mxu0 }
  0xa9   : > { %v1441_v47 = vadd.f32 %v1418_v34, %v458_v46  ;;  %v260_v46 = vld [vmem:[%s1375_s28 + $0xf8] sm:$0xff] }
  0xaa   : > { %v308_v51 = vpack.c.bf16 %v260_v46, %v259_v44 }
  0xab   : > { %v614_v49 = vmax.f32 %v1441_v47, 0.0 }
  0xad   : > { %v676_v52 = vpack.c.bf16 %v614_v49, %v613_v48 }
  0xaf   : > { %1259 = vmatmul.msk.bf16.gmra.mxu1 %vm743_vm1, %v676_v52 }
  0xb0   : > { %v461_v54 = vpop.f32.mrf.mxu0 }
  0xb1   : > { %v1454_v55 = vadd.f32 %v1418_v34, %v461_v54  ;;  %v266_v54 = vld [vmem:[%s1375_s28 + $0x128] sm:$0xff] }
  0xb3   : > { %1220 = vmatmul.msk.bf16.gmra.mxu0 %vm345_vm0, %v303_v53  ;;  %v615_v58 = vmax.f32 %v1454_v55, 0.0  ;;  %v265_v53 = vld [vmem:[%s1375_s28 + $0x120] sm:$0xff] }
  0xb8   : > { %v463_v56 = vpop.f32.mrf.mxu0 }
  0xb9   : > { %v1457_v57 = vadd.f32 %v1418_v34, %v463_v56  ;;  %v311_v56 = vpack.c.bf16 %v266_v54, %v265_v53 }
  0xbb   : > { %v616_v59 = vmax.f32 %v1457_v57, 0.0  ;;  %1228 = vmatmul.msk.bf16.gmra.mxu3 %vm345_vm0, %v311_v56 }
  0xbd   : > { %v677_v62 = vpack.c.bf16 %v616_v59, %v615_v58 }
  0xbf   : > { %1260 = vmatmul.msk.bf16.gmra.mxu1 %vm743_vm1, %v677_v62 }
  0xc0   : > { %v466_v0 = vpop.f32.mrf.mxu0 }
  0xc1   : > { %v1470_v1 = vadd.f32 %v1418_v34, %v466_v0 }
  0xc3   : > { %1221 = vmatmul.msk.bf16.gmra.mxu0 %vm345_vm0, %v304_v63  ;;  %v617_v4 = vmax.f32 %v1470_v1, 0.0 }
  0xc8   : > { %v468_v2 = vpop.f32.mrf.mxu0 }
  0xc9   : > { %v1473_v3 = vadd.f32 %v1418_v34, %v468_v2  ;;  %v261_v2 = vld [vmem:[%s1375_s28 + $0x100] sm:$0xff] }
  0xcb   : > { %v618_v5 = vmax.f32 %v1473_v3, 0.0 }
  0xcd   : > { %v678_v8 = vpack.c.bf16 %v618_v5, %v617_v4 }
  0xcf   : > { %1261 = vmatmul.msk.bf16.gmra.mxu1 %vm743_vm1, %v678_v8  ;;  %v309_v8 = vpack.c.bf16 %v262_v6, %v261_v2  ;;  %v271_v2 = vld [vmem:[%s1375_s28 + $0x150] sm:$0xff]  ;;  %v272_v6 = vld [vmem:[%s1375_s28 + $0x158] sm:$0xff] }
  0xd0   : > { %v471_v10 = vpop.f32.mrf.mxu0 }
  0xd1   : > { %v1486_v11 = vadd.f32 %v1418_v34, %v471_v10  ;;  %v267_v10 = vld [vmem:[%s1375_s28 + $0x130] sm:$0xff] }
  0xd3   : > { %1222 = vmatmul.msk.bf16.gmra.mxu0 %vm345_vm0, %v305_v9  ;;  %v619_v14 = vmax.f32 %v1486_v11, 0.0 }
  0xd8   : > { %v473_v12 = vpop.f32.mrf.mxu0 }
  0xd9   : > { %v1489_v13 = vadd.f32 %v1418_v34, %v473_v12  ;;  %v268_v12 = vld [vmem:[%s1375_s28 + $0x138] sm:$0xff] }
  0xda   : > { %v312_v16 = vpack.c.bf16 %v268_v12, %v267_v10 }
  0xdb   : > { %v620_v15 = vmax.f32 %v1489_v13, 0.0 }
  0xdc   : > { %1229 = vmatmul.msk.bf16.gmra.mxu3 %vm345_vm0, %v312_v16 }
  0xdd   : > { %v679_v18 = vpack.c.bf16 %v620_v15, %v619_v14 }
  0xdf   : > { %1262 = vmatmul.msk.bf16.gmra.mxu1 %vm743_vm1, %v679_v18 }
  0xe0   : > { %v476_v20 = vpop.f32.mrf.mxu0 }
  0xe1   : > { %v1502_v21 = vadd.f32 %v1418_v34, %v476_v20  ;;  %v1567_v20 = vld [vmem:[%s2246_s4] ss:$0 sm:$0xff] }
  0xe3   : > { %1223 = vmatmul.msk.bf16.gmra.mxu0 %vm345_vm0, %v306_v19  ;;  %v621_v24 = vmax.f32 %v1502_v21, 0.0 }
  0xe8   : > { %v478_v22 = vpop.f32.mrf.mxu0 }
  0xe9   : > { %v1505_v23 = vadd.f32 %v1418_v34, %v478_v22 }
  0xeb   : > { %v622_v25 = vmax.f32 %v1505_v23, 0.0 }
  0xed   : > { %v680_v28 = vpack.c.bf16 %v622_v25, %v621_v24 }
  0xef   : > { %1263 = vmatmul.msk.bf16.gmra.mxu1 %vm743_vm1, %v680_v28 }
  0xf0   : > { %v481_v30 = vpop.f32.mrf.mxu0 }
  0xf1   : > { %v1521_v36 = vadd.f32 %v1418_v34, %v481_v30 }
  0xf3   : > { %1224 = vmatmul.msk.bf16.gmra.mxu0 %vm345_vm0, %v307_v29  ;;  %v623_v42 = vmax.f32 %v1521_v36, 0.0 }
  0xf8   : > { %v483_v40 = vpop.f32.mrf.mxu0 }
  0xf9   : > { %v1524_v41 = vadd.f32 %v1418_v34, %v483_v40  ;;  %v313_v40 = vpack.c.bf16 %v270_v33, %v269_v32 }
  0xfb   : > { %v624_v43 = vmax.f32 %v1524_v41, 0.0  ;;  %1230 = vmatmul.msk.bf16.gmra.mxu3 %vm345_vm0, %v313_v40 }
  0xfd   : > { %v681_v50 = vpack.c.bf16 %v624_v43, %v623_v42 }
  0xff   : > { %1264 = vmatmul.msk.bf16.gmra.mxu1 %vm743_vm1, %v681_v50 }
 0x100   : > { %v486_v52 = vpop.f32.mrf.mxu0 }
 0x101   : > { %v1540_v60 = vadd.f32 %v1418_v34, %v486_v52 }
 0x103   : > { %1225 = vmatmul.msk.bf16.gmra.mxu0 %vm345_vm0, %v308_v51  ;;  %v625_v63 = vmax.f32 %v1540_v60, 0.0 }
 0x108   : > { %v488_v61 = vpop.f32.mrf.mxu0 }
 0x109   : > { %v1543_v62 = vadd.f32 %v1418_v34, %v488_v61 }
 0x10b   : > { %v626_v0 = vmax.f32 %v1543_v62, 0.0 }
 0x10d   : > { %v682_v7 = vpack.c.bf16 %v626_v0, %v625_v63 }
 0x10f   : > { %1265 = vmatmul.msk.bf16.gmra.mxu1 %vm743_vm1, %v682_v7  ;;  %v314_v7 = vpack.c.bf16 %v272_v6, %v271_v2 }
 0x110   : > { %v491_v9 = vpop.f32.mrf.mxu0 }
 0x111   : > { %v1559_v17 = vadd.f32 %v1418_v34, %v491_v9  ;;  %1231 = vmatmul.msk.bf16.gmra.mxu3 %vm345_vm0, %v314_v7 }
 0x113   : > { %1226 = vmatmul.msk.bf16.gmra.mxu0 %vm345_vm0, %v309_v8  ;;  %v627_v22 = vmax.f32 %v1559_v17, 0.0 }
 0x118   : > { %v493_v18 = vpop.f32.mrf.mxu0 }
 0x119   : > { %v1562_v19 = vadd.f32 %v1418_v34, %v493_v18 }
 0x11b   : > { %v628_v26 = vmax.f32 %v1562_v19, 0.0 }
 0x11c   : > { %v849_v27 = vpop.f32.mrf.mxu1 }
 0x11d   : > { %v683_v28 = vpack.c.bf16 %v628_v26, %v627_v22  ;;  %v850_v29 = vadd.f32 %v1567_v20, %v849_v27 }
 0x11f   : > { %v1009_v30 = vadd.f32 %v850_v29, %v611_v38  ;;  %1266 = vmatmul.msk.bf16.gmra.mxu1 %vm743_vm1, %v683_v28 }
 0x120   : > { %v496_v31 = vpop.f32.mrf.mxu0 }
 0x121   : > { %1073 = vst.msk [vmem:[%s1581_s19] sm:$0xff] %vm743_vm1, %v1009_v30  ;;  %v1593_v35 = vadd.f32 %v1418_v34, %v496_v31  ;;  %v273_v30 = vld [vmem:[%s1375_s28 + $0x160] sm:$0xff]  ;;  %v274_v31 = vld [vmem:[%s1375_s28 + $0x168] sm:$0xff] }
 0x122   : > { %v315_v32 = vpack.c.bf16 %v274_v31, %v273_v30 }
 0x123   : > { %v629_v52 = vmax.f32 %v1593_v35, 0.0 }
 0x124   : > { %v851_v44 = vpop.f32.mrf.mxu1  ;;  %1232 = vmatmul.msk.bf16.gmra.mxu3 %vm345_vm0, %v315_v32 }
 0x125   : > { %v852_v46 = vadd.f32 %v1567_v20, %v851_v44 }
 0x127   : > { %v1010_v38 = vadd.f32 %v852_v46, %v612_v39 }
 0x128   : > { %v498_v50 = vpop.f32.mrf.mxu0 }
 0x129   : > { %1074 = vst.msk [vmem:[%s1581_s19 + $0x8] sm:$0xff] %vm743_vm1, %v1010_v38  ;;  %v1600_v51 = vadd.f32 %v1418_v34, %v498_v50 }
 0x12b   : > { %v630_v53 = vmax.f32 %v1600_v51, 0.0 }
 0x12c   : > { %v854_v54 = vpop.f32.mrf.mxu1 }
 0x12d   : > { %v684_v56 = vpack.c.bf16 %v630_v53, %v629_v52  ;;  %v855_v37 = vadd.f32 %v1567_v20, %v854_v54 }
 0x12f   : > { %v1011_v39 = vadd.f32 %v855_v37, %v613_v48  ;;  %1267 = vmatmul.msk.bf16.gmra.mxu1 %vm743_vm1, %v684_v56 }
 0x130   : > { %v501_v61 = vpop.f32.mrf.mxu0 }
 0x131   : > { %1075 = vst.msk [vmem:[%s1581_s19 + $0x10] sm:$0xff] %vm743_vm1, %v1011_v39  ;;  %v1619_v10 = vadd.f32 %v1418_v34, %v501_v61  ;;  %v275_v39 = vld [vmem:[%s1375_s28 + $0x170] sm:$0xff]  ;;  %v276_v61 = vld [vmem:[%s1375_s28 + $0x178] sm:$0xff] }
 0x132   : > { %v316_v2 = vpack.c.bf16 %v276_v61, %v275_v39 }
 0x133   : > { %v631_v16 = vmax.f32 %v1619_v10, 0.0 }
 0x134   : > { %v856_v8 = vpop.f32.mrf.mxu1  ;;  %1233 = vmatmul.msk.bf16.gmra.mxu3 %vm345_vm0, %v316_v2 }
 0x135   : > { %v857_v9 = vadd.f32 %v1567_v20, %v856_v8 }
 0x137   : > { %v1012_v45 = vadd.f32 %v857_v9, %v614_v49 }
 0x138   : > { %v503_v48 = vpop.f32.mrf.mxu0 }
 0x139   : > { %1076 = vst.msk [vmem:[%s1581_s19 + $0x18] sm:$0xff] %vm743_vm1, %v1012_v45  ;;  %v1626_v12 = vadd.f32 %v1418_v34, %v503_v48 }
 0x13b   : > { %v632_v18 = vmax.f32 %v1626_v12, 0.0 }
 0x13c   : > { %v859_v27 = vpop.f32.mrf.mxu1 }
 0x13d   : > { %v685_v28 = vpack.c.bf16 %v632_v18, %v631_v16  ;;  %v860_v47 = vadd.f32 %v1567_v20, %v859_v27 }
 0x13f   : > { %v1013_v49 = vadd.f32 %v860_v47, %v615_v58  ;;  %1268 = vmatmul.msk.bf16.gmra.mxu1 %vm743_vm1, %v685_v28 }
 0x140   : > { %v506_v29 = vpop.f32.mrf.mxu0 }
 0x141   : > { %1077 = vst.msk [vmem:[%s1581_s19 + $0x20] sm:$0xff] %vm743_vm1, %v1013_v49  ;;  %v1645_v44 = vadd.f32 %v1418_v34, %v506_v29  ;;  %v277_v49 = vld [vmem:[%s1375_s28 + $0x180] sm:$0xff]  ;;  %v278_v29 = vld [vmem:[%s1375_s28 + $0x188] sm:$0xff] }
 0x142   : > { %v317_v30 = vpack.c.bf16 %v278_v29, %v277_v49  ;;  %v281_v49 = vld [vmem:[%s1375_s28 + $0x1a0] sm:$0xff]  ;;  %v282_v29 = vld [vmem:[%s1375_s28 + $0x1a8] sm:$0xff] }
 0x143   : > { %v633_v38 = vmax.f32 %v1645_v44, 0.0 }
 0x144   : > { %v861_v33 = vpop.f32.mrf.mxu1  ;;  %1234 = vmatmul.msk.bf16.gmra.mxu3 %vm345_vm0, %v317_v30  ;;  %v319_v30 = vpack.c.bf16 %v282_v29, %v281_v49 }
 0x145   : > { %v862_v40 = vadd.f32 %v1567_v20, %v861_v33 }
 0x147   : > { %v1014_v55 = vadd.f32 %v862_v40, %v616_v59 }
 0x148   : > { %v508_v58 = vpop.f32.mrf.mxu0 }
 0x149   : > { %1078 = vst.msk [vmem:[%s1581_s19 + $0x28] sm:$0xff] %vm743_vm1, %v1014_v55  ;;  %v1652_v46 = vadd.f32 %v1418_v34, %v508_v58 }
 0x14b   : > { %v634_v50 = vmax.f32 %v1652_v46, 0.0 }
 0x14c   : > { %v864_v54 = vpop.f32.mrf.mxu1 }
 0x14d   : > { %v686_v56 = vpack.c.bf16 %v634_v50, %v633_v38  ;;  %v865_v57 = vadd.f32 %v1567_v20, %v864_v54 }
 0x14f   : > { %v1015_v59 = vadd.f32 %v865_v57, %v617_v4  ;;  %1269 = vmatmul.msk.bf16.gmra.mxu1 %vm743_vm1, %v686_v56 }
 0x150   : > { %v511_v37 = vpop.f32.mrf.mxu0 }
 0x151   : > { %1079 = vst.msk [vmem:[%s1581_s19 + $0x30] sm:$0xff] %vm743_vm1, %v1015_v59  ;;  %v1671_v8 = vadd.f32 %v1418_v34, %v511_v37  ;;  %v279_v59 = vld [vmem:[%s1375_s28 + $0x190] sm:$0xff]  ;;  %v280_v37 = vld [vmem:[%s1375_s28 + $0x198] sm:$0xff] }
 0x152   : > { %v318_v39 = vpack.c.bf16 %v280_v37, %v279_v59 }
 0x153   : > { %v635_v45 = vmax.f32 %v1671_v8, 0.0 }
 0x154   : > { %v866_v6 = vpop.f32.mrf.mxu1  ;;  %1235 = vmatmul.msk.bf16.gmra.mxu3 %vm345_vm0, %v318_v39  ;;  %v283_v39 = vld [vmem:[%s1375_s28 + $0x1b0] sm:$0xff] }
 0x155   : > { %v867_v7 = vadd.f32 %v1567_v20, %v866_v6 }
 0x157   : > { %v1016_v1 = vadd.f32 %v867_v7, %v618_v5  ;;  %v536_v7 = vpop.f32.mrf.mxu3 }
 0x158   : > { %v513_v4 = vpop.f32.mrf.mxu0 }
 0x159   : > { %1080 = vst.msk [vmem:[%s1581_s19 + $0x38] sm:$0xff] %vm743_vm1, %v1016_v1  ;;  %v1678_v9 = vadd.f32 %v1418_v34, %v513_v4 }
 0x15b   : > { %v636_v48 = vmax.f32 %v1678_v9, 0.0 }
 0x15c   : > { %v869_v27 = vpop.f32.mrf.mxu1 }
 0x15d   : > { %v687_v28 = vpack.c.bf16 %v636_v48, %v635_v45  ;;  %v870_v3 = vadd.f32 %v1567_v20, %v869_v27 }
 0x15f   : > { %v1017_v5 = vadd.f32 %v870_v3, %v619_v14  ;;  %1270 = vmatmul.msk.bf16.gmra.mxu1 %vm743_vm1, %v687_v28 }
 0x160   : > { %v516_v47 = vpop.f32.mrf.mxu0 }
 0x161   : > { %1081 = vst.msk [vmem:[%s1581_s19 + $0x40] sm:$0xff] %vm743_vm1, %v1017_v5  ;;  %v1697_v33 = vadd.f32 %v1418_v34, %v516_v47  ;;  %v538_v47 = vpop.f32.mrf.mxu3 }
 0x163   : > { %v637_v55 = vmax.f32 %v1697_v33, 0.0 }
 0x164   : > { %v871_v31 = vpop.f32.mrf.mxu1  ;;  %1236 = vmatmul.msk.bf16.gmra.mxu3 %vm345_vm0, %v319_v30 }
 0x165   : > { %v872_v32 = vadd.f32 %v1567_v20, %v871_v31 }
 0x167   : > { %v1018_v11 = vadd.f32 %v872_v32, %v620_v15 }
 0x168   : > { %v518_v14 = vpop.f32.mrf.mxu0 }
 0x169   : > { %1082 = vst.msk [vmem:[%s1581_s19 + $0x48] sm:$0xff] %vm743_vm1, %v1018_v11  ;;  %v1704_v40 = vadd.f32 %v1418_v34, %v518_v14  ;;  %v541_v14 = vpop.f32.mrf.mxu3 }
 0x16b   : > { %v638_v58 = vmax.f32 %v1704_v40, 0.0 }
 0x16c   : > { %v874_v54 = vpop.f32.mrf.mxu1 }
 0x16d   : > { %v688_v56 = vpack.c.bf16 %v638_v58, %v637_v55  ;;  %v875_v13 = vadd.f32 %v1567_v20, %v874_v54 }
 0x16f   : > { %v1019_v15 = vadd.f32 %v875_v13, %v621_v24  ;;  %1271 = vmatmul.msk.bf16.gmra.mxu1 %vm743_vm1, %v688_v56 }
 0x170   : > { %v521_v57 = vpop.f32.mrf.mxu0 }
 0x171   : > { %1083 = vst.msk [vmem:[%s1581_s19 + $0x50] sm:$0xff] %vm743_vm1, %v1019_v15  ;;  %v1723_v6 = vadd.f32 %v1418_v34, %v521_v57  ;;  %v543_v37 = vpop.f32.mrf.mxu3 }
 0x173   : > { %v639_v4 = vmax.f32 %v1723_v6, 0.0 }
 0x174   : > { %v876_v61 = vpop.f32.mrf.mxu1 }
 0x175   : > { %v877_v2 = vadd.f32 %v1567_v20, %v876_v61  ;;  %v284_v61 = vld [vmem:[%s1375_s28 + $0x1b8] sm:$0xff] }
 0x177   : > { %v1020_v21 = vadd.f32 %v877_v2, %v622_v25  ;;  %v320_v2 = vpack.c.bf16 %v284_v61, %v283_v39 }
 0x178   : > { %v523_v24 = vpop.f32.mrf.mxu0 }
 0x179   : > { %1084 = vst.msk [vmem:[%s1581_s19 + $0x58] sm:$0xff] %vm743_vm1, %v1020_v21  ;;  %v1730_v1 = vadd.f32 %v1418_v34, %v523_v24  ;;  %1237 = vmatmul.msk.bf16.gmra.mxu3 %vm345_vm0, %v320_v2  ;;  %v288_v2 = vld [vmem:[%s1375_s28 + $0x1d8] sm:$0xff] }
 0x17b   : > { %v640_v27 = vmax.f32 %v1730_v1, 0.0 }
 0x17c   : > { %v879_v28 = vpop.f32.mrf.mxu1 }
 0x17d   : > { %v689_v23 = vpack.c.bf16 %v640_v27, %v639_v4  ;;  %v880_v25 = vadd.f32 %v1567_v20, %v879_v28 }
 0x17f   : > { %v1021_v3 = vadd.f32 %v880_v25, %v623_v42  ;;  %1272 = vmatmul.msk.bf16.gmra.mxu1 %vm743_vm1, %v689_v23  ;;  %v546_v23 = vpop.f32.mrf.mxu3 }
 0x180   : > { %v526_v5 = vpop.f32.mrf.mxu0 }
 0x181   : > { %1085 = vst.msk [vmem:[%s1581_s19 + $0x60] sm:$0xff] %vm743_vm1, %v1021_v3  ;;  %v1749_v11 = vadd.f32 %v1418_v34, %v526_v5 }
 0x183   : > { %v641_v56 = vmax.f32 %v1749_v11, 0.0 }
 0x184   : > { %v881_v31 = vpop.f32.mrf.mxu1 }
 0x185   : > { %v882_v32 = vadd.f32 %v1567_v20, %v881_v31  ;;  %v285_v31 = vld [vmem:[%s1375_s28 + $0x1c0] sm:$0xff] }
 0x187   : > { %v1022_v36 = vadd.f32 %v882_v32, %v624_v43  ;;  %v548_v30 = vpop.f32.mrf.mxu3  ;;  %v286_v32 = vld [vmem:[%s1375_s28 + $0x1c8] sm:$0xff] }
 0x188   : > { %v528_v42 = vpop.f32.mrf.mxu0 }
 0x189   : > { %1086 = vst.msk [vmem:[%s1581_s19 + $0x68] sm:$0xff] %vm743_vm1, %v1022_v36  ;;  %v1756_v54 = vadd.f32 %v1418_v34, %v528_v42  ;;  %v321_v36 = vpack.c.bf16 %v286_v32, %v285_v31  ;;  %v290_v32 = vld [vmem:[%s1375_s28 + $0x1e8] sm:$0xff] }
 0x18b   : > { %v642_v13 = vmax.f32 %v1756_v54, 0.0  ;;  %1238 = vmatmul.msk.bf16.gmra.mxu3 %vm345_vm0, %v321_v36 }
 0x18c   : > { %v884_v15 = vpop.f32.mrf.mxu1 }
 0x18d   : > { %v690_v41 = vpack.c.bf16 %v642_v13, %v641_v56  ;;  %v885_v43 = vadd.f32 %v1567_v20, %v884_v15  ;;  %v1799_v15 = vadd.f32 %v1418_v34, %v536_v7 }
 0x18f   : > { %v1023_v57 = vadd.f32 %v885_v43, %v625_v63  ;;  %1273 = vmatmul.msk.bf16.gmra.mxu1 %vm743_vm1, %v690_v41  ;;  %v1802_v41 = vadd.f32 %v1418_v34, %v538_v47  ;;  %v551_v43 = vpop.f32.mrf.mxu3 }
 0x190   : > { %v531_v59 = vpop.f32.mrf.mxu0 }
 0x191   : > { %1087 = vst.msk [vmem:[%s1581_s19 + $0x70] sm:$0xff] %vm743_vm1, %v1023_v57  ;;  %v1775_v60 = vadd.f32 %v1418_v34, %v531_v59  ;;  %v645_v57 = vmax.f32 %v1799_v15, 0.0  ;;  %v646_v59 = vmax.f32 %v1802_v41, 0.0 }
 0x193   : > { %v643_v3 = vmax.f32 %v1775_v60, 0.0  ;;  %v692_v47 = vpack.c.bf16 %v646_v59, %v645_v57 }
 0x194   : > { %v886_v21 = vpop.f32.mrf.mxu1 }
 0x195   : > { %v887_v24 = vadd.f32 %v1567_v20, %v886_v21 }
 0x197   : > { %v1024_v63 = vadd.f32 %v887_v24, %v626_v0  ;;  %v553_v19 = vpop.f32.mrf.mxu3 }
 0x198   : > { %v533_v28 = vpop.f32.mrf.mxu0 }
 0x199   : > { %1088 = vst.msk [vmem:[%s1581_s19 + $0x78] sm:$0xff] %vm743_vm1, %v1024_v63  ;;  %v1782_v25 = vadd.f32 %v1418_v34, %v533_v28  ;;  %v1825_v63 = vadd.f32 %v1418_v34, %v541_v14  ;;  %v1828_v28 = vadd.f32 %v1418_v34, %v543_v37 }
 0x19b   : > { %v644_v5 = vmax.f32 %v1782_v25, 0.0 }
 0x19c   : > { %v889_v49 = vpop.f32.mrf.mxu1 }
 0x19d   : > { %v691_v29 = vpack.c.bf16 %v644_v5, %v643_v3  ;;  %v890_v62 = vadd.f32 %v1567_v20, %v889_v49 }
 0x19f   : > { %v1025_v0 = vadd.f32 %v890_v62, %v627_v22  ;;  %1274 = vmatmul.msk.bf16.vlgmr.msra.gmra.mxu2 %vm743_vm1, %v691_v29  ;;  %v556_v49 = vpop.f32.mrf.mxu3  ;;  %v647_v29 = vmax.f32 %v1825_v63, 0.0  ;;  %v648_v62 = vmax.f32 %v1828_v28, 0.0 }
 0x1a1   : > { %1089 = vst.msk [vmem:[%s1581_s19 + $0x80] sm:$0xff] %vm743_vm1, %v1025_v0  ;;  %v693_v37 = vpack.c.bf16 %v648_v62, %v647_v29 }
 0x1a4   : > { %v891_v42 = vpop.f32.mrf.mxu1 }
 0x1a5   : > { %v892_v17 = vadd.f32 %v1567_v20, %v891_v42 }
 0x1a7   : > { %v1026_v22 = vadd.f32 %v892_v17, %v628_v26  ;;  %v287_v26 = vld [vmem:[%s1375_s28 + $0x1d0] sm:$0xff]  ;;  %v558_v51 = vpop.f32.mrf.mxu3  ;;  %v1851_v17 = vadd.f32 %v1418_v34, %v546_v23 }
 0x1a8   : > { %v322_v21 = vpack.c.bf16 %v288_v2, %v287_v26  ;;  %v292_v2 = vld [vmem:[%s1375_s28 + $0x1f8] sm:$0xff] }
 0x1a9   : > { %1090 = vst.msk [vmem:[%s1581_s19 + $0x88] sm:$0xff] %vm743_vm1, %v1026_v22  ;;  %v1854_v22 = vadd.f32 %v1418_v34, %v548_v30 }
 0x1aa   : > { %1239 = vmatmul.msk.bf16.gmra.mxu3 %vm345_vm0, %v322_v21 }
 0x1ac   : > { %v894_v7 = vpop.f32.mrf.mxu1 }
 0x1ad   : > { %v895_v39 = vadd.f32 %v1567_v20, %v894_v7 }
 0x1af   : > { %v1027_v61 = vadd.f32 %v895_v39, %v629_v52  ;;  %1275 = vmatmul.msk.bf16.gmra.mxu2 %vm743_vm1, %v692_v47  ;;  %v561_v7 = vpop.f32.mrf.mxu3  ;;  %v649_v39 = vmax.f32 %v1851_v17, 0.0  ;;  %v650_v47 = vmax.f32 %v1854_v22, 0.0 }
 0x1b1   : > { %1091 = vst.msk [vmem:[%s1581_s19 + $0x90] sm:$0xff] %vm743_vm1, %v1027_v61  ;;  %v694_v30 = vpack.c.bf16 %v650_v47, %v649_v39 }
 0x1b4   : > { %v896_v24 = vpop.f32.mrf.mxu1 }
 0x1b5   : > { %v897_v35 = vadd.f32 %v1567_v20, %v896_v24 }
 0x1b7   : > { %v1028_v52 = vadd.f32 %v897_v35, %v630_v53  ;;  %v289_v53 = vld [vmem:[%s1375_s28 + $0x1e0] sm:$0xff]  ;;  %v563_v12 = vpop.f32.mrf.mxu3  ;;  %v1877_v35 = vadd.f32 %v1418_v34, %v551_v43 }
 0x1b8   : > { %v323_v36 = vpack.c.bf16 %v290_v32, %v289_v53  ;;  %v1901_v32 = vadd.f32 %v1418_v34, %v556_v49 }
 0x1b9   : > { %1092 = vst.msk [vmem:[%s1581_s19 + $0x98] sm:$0xff] %vm743_vm1, %v1028_v52  ;;  %v1880_v52 = vadd.f32 %v1418_v34, %v553_v19 }
 0x1ba   : > { %1240 = vmatmul.msk.bf16.gmra.mxu3 %vm345_vm0, %v323_v36  ;;  %v1904_v36 = vadd.f32 %v1418_v34, %v558_v51  ;;  %v653_v8 = vmax.f32 %v1901_v32, 0.0 }
 0x1bc   : > { %v899_v14 = vpop.f32.mrf.mxu1 }
 0x1bd   : > { %v900_v0 = vadd.f32 %v1567_v20, %v899_v14 }
 0x1bf   : > { %v1029_v31 = vadd.f32 %v900_v0, %v631_v16  ;;  %1276 = vmatmul.msk.bf16.gmra.mxu2 %vm743_vm1, %v693_v37  ;;  %v566_v14 = vpop.f32.mrf.mxu3  ;;  %v651_v0 = vmax.f32 %v1877_v35, 0.0  ;;  %v652_v37 = vmax.f32 %v1880_v52, 0.0 }
 0x1c1   : > { %1093 = vst.msk [vmem:[%s1581_s19 + $0xa0] sm:$0xff] %vm743_vm1, %v1029_v31  ;;  %v695_v19 = vpack.c.bf16 %v652_v37, %v651_v0 }
 0x1c4   : > { %v901_v42 = vpop.f32.mrf.mxu1 }
 0x1c5   : > { %v902_v10 = vadd.f32 %v1567_v20, %v901_v42 }
 0x1c7   : > { %v1030_v16 = vadd.f32 %v902_v10, %v632_v18  ;;  %v291_v18 = vld [vmem:[%s1375_s28 + $0x1f0] sm:$0xff] }
 0x1c8   : > { %v324_v21 = vpack.c.bf16 %v292_v2, %v291_v18 }
 0x1c9   : > { %1094 = vst.msk [vmem:[%s1581_s19 + $0xa8] sm:$0xff] %vm743_vm1, %v1030_v16 }
 0x1ca   : > { %1241 = vmatmul.msk.bf16.gmra.mxu3 %vm345_vm0, %v324_v21 }
 0x1cc   : > { %v904_v23 = vpop.f32.mrf.mxu1 }
 0x1cd   : > { %v905_v61 = vadd.f32 %v1567_v20, %v904_v23 }
 0x1cf   : > { %v1031_v26 = vadd.f32 %v905_v61, %v633_v38  ;;  %1277 = vmatmul.msk.bf16.gmra.mxu2 %vm743_vm1, %v694_v30  ;;  %v1924_v61 = vadd.f32 %v1418_v34, %v561_v7  ;;  %v1927_v30 = vadd.f32 %v1418_v34, %v563_v12 }
 0x1d1   : > { %1095 = vst.msk [vmem:[%s1581_s19 + $0xb0] sm:$0xff] %vm743_vm1, %v1031_v26  ;;  %v655_v33 = vmax.f32 %v1924_v61, 0.0 }
 0x1d4   : > { %v906_v24 = vpop.f32.mrf.mxu1 }
 0x1d5   : > { %v907_v44 = vadd.f32 %v1567_v20, %v906_v24 }
 0x1d7   : > { %v1032_v38 = vadd.f32 %v907_v44, %v634_v50  ;;  %v568_v50 = vpop.f32.mrf.mxu3  ;;  %v1947_v44 = vadd.f32 %v1418_v34, %v566_v14 }
 0x1d9   : > { %1096 = vst.msk [vmem:[%s1581_s19 + $0xb8] sm:$0xff] %vm743_vm1, %v1032_v38  ;;  %v1950_v38 = vadd.f32 %v1418_v34, %v568_v50  ;;  %v657_v6 = vmax.f32 %v1947_v44, 0.0 }
 0x1dc   : > { %v909_v43 = vpop.f32.mrf.mxu1 }
 0x1dd   : > { %v910_v31 = vadd.f32 %v1567_v20, %v909_v43 }
 0x1df   : > { %v1033_v46 = vadd.f32 %v910_v31, %v635_v45  ;;  %1278 = vmatmul.msk.bf16.gmra.mxu2 %vm743_vm1, %v695_v19  ;;  %v654_v45 = vmax.f32 %v1904_v36, 0.0  ;;  %v571_v23 = vpop.f32.mrf.mxu3 }
 0x1e1   : > { %1097 = vst.msk [vmem:[%s1581_s19 + $0xc0] sm:$0xff] %vm743_vm1, %v1033_v46  ;;  %v696_v49 = vpack.c.bf16 %v654_v45, %v653_v8 }
 0x1e4   : > { %v911_v53 = vpop.f32.mrf.mxu1 }
 0x1e5   : > { %v912_v42 = vadd.f32 %v1567_v20, %v911_v53 }
 0x1e7   : > { %v1034_v10 = vadd.f32 %v912_v42, %v636_v48  ;;  %v573_v18 = vpop.f32.mrf.mxu3  ;;  %v1970_v42 = vadd.f32 %v1418_v34, %v571_v23 }
 0x1e9   : > { %1098 = vst.msk [vmem:[%s1581_s19 + $0xc8] sm:$0xff] %vm743_vm1, %v1034_v10  ;;  %v1973_v10 = vadd.f32 %v1418_v34, %v573_v18  ;;  %v659_v11 = vmax.f32 %v1970_v42, 0.0 }
 0x1ec   : > { %v914_v16 = vpop.f32.mrf.mxu1 }
 0x1ed   : > { %v915_v51 = vadd.f32 %v1567_v20, %v914_v16 }
 0x1ef   : > { %v1035_v9 = vadd.f32 %v915_v51, %v637_v55  ;;  %1279 = vmatmul.msk.bf16.gmra.mxu2 %vm743_vm1, %v696_v49  ;;  %v656_v55 = vmax.f32 %v1927_v30, 0.0  ;;  %v576_v40 = vpop.f32.mrf.mxu3 }
 0x1f0   : > { %v1989_v54 = vadd.f32 %v1418_v34, %v576_v40 }
 0x1f1   : > { %1099 = vst.msk [vmem:[%s1581_s19 + $0xd0] sm:$0xff] %vm743_vm1, %v1035_v9  ;;  %v697_v7 = vpack.c.bf16 %v656_v55, %v655_v33 }
 0x1f4   : > { %v916_v48 = vpop.f32.mrf.mxu1 }
 0x1f5   : > { %v917_v26 = vadd.f32 %v1567_v20, %v916_v48 }
 0x1f7   : > { %v1036_v2 = vadd.f32 %v917_v26, %v638_v58  ;;  %v578_v31 = vpop.f32.mrf.mxu3 }
 0x1f9   : > { %1100 = vst.msk [vmem:[%s1581_s19 + $0xd8] sm:$0xff] %vm743_vm1, %v1036_v2  ;;  %v661_v2 = vmax.f32 %v1989_v54, 0.0 }
 0x1fc   : > { %v919_v21 = vpop.f32.mrf.mxu1 }
 0x1fd   : > { %v920_v12 = vadd.f32 %v1567_v20, %v919_v21 }
 0x1ff   : > { %v1037_v24 = vadd.f32 %v920_v12, %v639_v4  ;;  %1280 = vmatmul.msk.bf16.gmra.mxu2 %vm743_vm1, %v697_v7  ;;  %v658_v4 = vmax.f32 %v1950_v38, 0.0  ;;  %v581_v53 = vpop.f32.mrf.mxu3 }
 0x201   : > { %1101 = vst.msk [vmem:[%s1581_s19 + $0xe0] sm:$0xff] %vm743_vm1, %v1037_v24  ;;  %v698_v14 = vpack.c.bf16 %v658_v4, %v657_v6 }
 0x204   : > { %v921_v58 = vpop.f32.mrf.mxu1 }
 0x205   : > { %v922_v43 = vadd.f32 %v1567_v20, %v921_v58 }
 0x207   : > { %v1038_v19 = vadd.f32 %v922_v43, %v640_v27  ;;  %v583_v51 = vpop.f32.mrf.mxu3  ;;  %v2012_v43 = vadd.f32 %v1418_v34, %v581_v53 }
 0x209   : > { %1102 = vst.msk [vmem:[%s1581_s19 + $0xe8] sm:$0xff] %vm743_vm1, %v1038_v19  ;;  %v2015_v19 = vadd.f32 %v1418_v34, %v583_v51  ;;  %v663_v25 = vmax.f32 %v2012_v43, 0.0 }
 0x20c   : > { %v924_v46 = vpop.f32.mrf.mxu1 }
 0x20d   : > { %v925_v50 = vadd.f32 %v1567_v20, %v924_v46 }
 0x20f   : > { %v1039_v1 = vadd.f32 %v925_v50, %v641_v56  ;;  %1281 = vmatmul.msk.bf16.gmra.mxu2 %vm743_vm1, %v698_v14  ;;  %v660_v56 = vmax.f32 %v1973_v10, 0.0  ;;  %v586_v18 = vpop.f32.mrf.mxu3 }
 0x210   : > { %v2035_v53 = vadd.f32 %v1418_v34, %v586_v18 }
 0x211   : > { %1103 = vst.msk [vmem:[%s1581_s19 + $0xf0] sm:$0xff] %vm743_vm1, %v1039_v1  ;;  %v699_v23 = vpack.c.bf16 %v660_v56, %v659_v11 }
 0x212   : > { %v665_v41 = vmax.f32 %v2035_v53, 0.0 }
 0x214   : > { %v926_v27 = vpop.f32.mrf.mxu1 }
 0x215   : > { %v927_v16 = vadd.f32 %v1567_v20, %v926_v27 }
 0x217   : > { %v1040_v49 = vadd.f32 %v927_v16, %v642_v13  ;;  %v1992_v13 = vadd.f32 %v1418_v34, %v578_v31  ;;  %v588_v40 = vpop.f32.mrf.mxu3 }
 0x218   : > { %v2038_v16 = vadd.f32 %v1418_v34, %v588_v40 }
 0x219   : > { %1104 = vst.msk [vmem:[%s1581_s19 + $0xf8] sm:$0xff] %vm743_vm1, %v1040_v49  ;;  %v662_v21 = vmax.f32 %v1992_v13, 0.0 }
 0x21b   : > { %v700_v24 = vpack.c.bf16 %v662_v21, %v661_v2 }
 0x21f   : > { %1282 = vmatmul.msk.bf16.gmra.mxu2 %vm743_vm1, %v699_v23  ;;  %v591_v50 = vpop.f32.mrf.mxu3 }
 0x222   : > { %v929_v9 = vpop.f32.mrf.mxu2 }
 0x223   : > { %v930_v48 = vadd.f32 %v1567_v20, %v929_v9 }
 0x225   : > { %v1041_v26 = vadd.f32 %v930_v48, %v643_v3 }
 0x227   : > { %1105 = vst.msk [vmem:[%s1581_s19 + $0x100] sm:$0xff] %vm743_vm1, %v1041_v26  ;;  %v593_v23 = vpop.f32.mrf.mxu3 }
 0x22a   : > { %v931_v7 = vpop.f32.mrf.mxu2 }
 0x22b   : > { %v932_v12 = vadd.f32 %v1567_v20, %v931_v7  ;;  %v2058_v7 = vadd.f32 %v1418_v34, %v591_v50 }
 0x22d   : > { %v1042_v60 = vadd.f32 %v932_v12, %v644_v5  ;;  %v664_v5 = vmax.f32 %v2015_v19, 0.0  ;;  %v2061_v12 = vadd.f32 %v1418_v34, %v593_v23  ;;  %v667_v28 = vmax.f32 %v2058_v7, 0.0 }
 0x22f   : > { %1106 = vst.msk [vmem:[%s1581_s19 + $0x108] sm:$0xff] %vm743_vm1, %v1042_v60  ;;  %1283 = vmatmul.msk.bf16.gmra.mxu2 %vm743_vm1, %v700_v24  ;;  %v701_v1 = vpack.c.bf16 %v664_v5, %v663_v25 }
 0x232   : > { %v934_v3 = vpop.f32.mrf.mxu2 }
 0x233   : > { %v935_v58 = vadd.f32 %v1567_v20, %v934_v3 }
 0x235   : > { %v1043_v31 = vadd.f32 %v935_v58, %v645_v57 }
 0x237   : > { %1107 = vst.msk [vmem:[%s1581_s19 + $0x110] sm:$0xff] %vm743_vm1, %v1043_v31 }
 0x23a   : > { %v936_v46 = vpop.f32.mrf.mxu2 }
 0x23b   : > { %v937_v14 = vadd.f32 %v1567_v20, %v936_v46 }
 0x23d   : > { %v1044_v15 = vadd.f32 %v937_v14, %v646_v59  ;;  %v666_v59 = vmax.f32 %v2038_v16, 0.0 }
 0x23f   : > { %1108 = vst.msk [vmem:[%s1581_s19 + $0x118] sm:$0xff] %vm743_vm1, %v1044_v15  ;;  %1284 = vmatmul.msk.bf16.gmra.mxu2 %vm743_vm1, %v701_v1  ;;  %v702_v48 = vpack.c.bf16 %v666_v59, %v665_v41 }
 0x242   : > { %v939_v57 = vpop.f32.mrf.mxu2 }
 0x243   : > { %v940_v27 = vadd.f32 %v1567_v20, %v939_v57 }
 0x245   : > { %v1045_v49 = vadd.f32 %v940_v27, %v647_v29  ;;  %v596_v29 = vpop.f32.mrf.mxu3 }
 0x246   : > { %v2081_v14 = vadd.f32 %v1418_v34, %v596_v29 }
 0x247   : > { %1109 = vst.msk [vmem:[%s1581_s19 + $0x120] sm:$0xff] %vm743_vm1, %v1045_v49 }
 0x248   : > { %v669_v22 = vmax.f32 %v2081_v14, 0.0 }
 0x24a   : > { %v941_v51 = vpop.f32.mrf.mxu2 }
 0x24b   : > { %v942_v9 = vadd.f32 %v1567_v20, %v941_v51 }
 0x24d   : > { %v1046_v63 = vadd.f32 %v942_v9, %v648_v62  ;;  %v668_v62 = vmax.f32 %v2061_v12, 0.0  ;;  %v598_v3 = vpop.f32.mrf.mxu3 }
 0x24e   : > { %v2084_v50 = vadd.f32 %v1418_v34, %v598_v3 }
 0x24f   : > { %1110 = vst.msk [vmem:[%s1581_s19 + $0x128] sm:$0xff] %vm743_vm1, %v1046_v63  ;;  %1285 = vmatmul.msk.bf16.gmra.mxu2 %vm743_vm1, %v702_v48  ;;  %v703_v58 = vpack.c.bf16 %v668_v62, %v667_v28 }
 0x252   : > { %v944_v26 = vpop.f32.mrf.mxu2 }
 0x253   : > { %v945_v18 = vadd.f32 %v1567_v20, %v944_v26 }
 0x255   : > { %v1047_v24 = vadd.f32 %v945_v18, %v649_v39  ;;  %v601_v46 = vpop.f32.mrf.mxu3 }
 0x256   : > { %v2104_v51 = vadd.f32 %v1418_v34, %v601_v46 }
 0x257   : > { %1111 = vst.msk [vmem:[%s1581_s19 + $0x130] sm:$0xff] %vm743_vm1, %v1047_v24 }
 0x25a   : > { %v946_v60 = vpop.f32.mrf.mxu2 }
 0x25b   : > { %v947_v40 = vadd.f32 %v1567_v20, %v946_v60  ;;  %v1314_v60 = vld [vmem:[%s2244_s2] ss:$0 sm:$0xff] }
 0x25d   : > { %v1048_v17 = vadd.f32 %v947_v40, %v650_v47  ;;  %v670_v47 = vmax.f32 %v2084_v50, 0.0  ;;  %v603_v35 = vpop.f32.mrf.mxu3 }
 0x25e   : > { %v2107_v9 = vadd.f32 %v1418_v34, %v603_v35 }
 0x25f   : > { %1112 = vst.msk [vmem:[%s1581_s19 + $0x138] sm:$0xff] %vm743_vm1, %v1048_v17  ;;  %1286 = vmatmul.msk.bf16.gmra.mxu2 %vm743_vm1, %v703_v58  ;;  %v704_v27 = vpack.c.bf16 %v670_v47, %v669_v22 }
 0x260   : > { %v672_v63 = vmax.f32 %v2107_v9, 0.0 }
 0x262   : > { %v949_v39 = vpop.f32.mrf.mxu2 }
 0x263   : > { %v950_v31 = vadd.f32 %v1567_v20, %v949_v39 }
 0x265   : > { %v1049_v1 = vadd.f32 %v950_v31, %v651_v0  ;;  %v606_v52 = vpop.f32.mrf.mxu3 }
 0x266   : > { %v2129_v3 = vadd.f32 %v1314_v60, %v606_v52 }
 0x267   : > { %1113 = vst.msk [vmem:[%s1581_s19 + $0x140] sm:$0xff] %vm743_vm1, %v1049_v1 }
 0x26a   : > { %v951_v15 = vpop.f32.mrf.mxu2 }
 0x26b   : > { %v952_v57 = vadd.f32 %v1567_v20, %v951_v15 }
 0x26d   : > { %v1050_v49 = vadd.f32 %v952_v57, %v652_v37  ;;  %v671_v37 = vmax.f32 %v2104_v51, 0.0 }
 0x26f   : > { %1114 = vst.msk [vmem:[%s1581_s19 + $0x148] sm:$0xff] %vm743_vm1, %v1050_v49  ;;  %1287 = vmatmul.msk.bf16.gmra.mxu2 %vm743_vm1, %v704_v27  ;;  %v705_v34 = vpack.c.bf16 %v672_v63, %v671_v37 }
 0x272   : > { %v954_v0 = vpop.f32.mrf.mxu2 }
 0x273   : > { %v955_v23 = vadd.f32 %v1567_v20, %v954_v0 }
 0x275   : > { %v1051_v48 = vadd.f32 %v955_v23, %v653_v8  ;;  %v608_v8 = vpop.f32.mrf.mxu3 }
 0x276   : > { %v2131_v40 = vadd.f32 %v1314_v60, %v608_v8 }
 0x277   : > { %1115 = vst.msk [vmem:[%s1581_s19 + $0x150] sm:$0xff] %vm743_vm1, %v1051_v48 }
 0x278   : > { %v674_v58 = vmax.f32 %v2131_v40, 0.0 }
 0x27a   : > { %v956_v29 = vpop.f32.mrf.mxu2 }
 0x27b   : > { %v957_v26 = vadd.f32 %v1567_v20, %v956_v29 }
 0x27d   : > { %v1052_v32 = vadd.f32 %v957_v26, %v654_v45  ;;  %v673_v45 = vmax.f32 %v2129_v3, 0.0 }
 0x27f   : > { %1116 = vst.msk [vmem:[%s1581_s19 + $0x158] sm:$0xff] %vm743_vm1, %v1052_v32  ;;  %1288 = vmatmul.msk.bf16.gmra.mxu2 %vm743_vm1, %v705_v34  ;;  %v706_v31 = vpack.c.bf16 %v674_v58, %v673_v45 }
 0x282   : > { %v959_v18 = vpop.f32.mrf.mxu2 }
 0x283   : > { %v960_v24 = vadd.f32 %v1567_v20, %v959_v18 }
 0x285   : > { %v1053_v36 = vadd.f32 %v960_v24, %v655_v33 }
 0x287   : > { %1117 = vst.msk [vmem:[%s1581_s19 + $0x160] sm:$0xff] %vm743_vm1, %v1053_v36 }
 0x28a   : > { %v961_v17 = vpop.f32.mrf.mxu2 }
 0x28b   : > { %v962_v39 = vadd.f32 %v1567_v20, %v961_v17 }
 0x28d   : > { %v1054_v61 = vadd.f32 %v962_v39, %v656_v55 }
 0x28f   : > { %1118 = vst.msk [vmem:[%s1581_s19 + $0x168] sm:$0xff] %vm743_vm1, %v1054_v61  ;;  %1289 = vmatmul.msk.bf16.gmra.mxu2 %vm743_vm1, %v706_v31 }
 0x292   : > { %v964_v33 = vpop.f32.mrf.mxu2 }
 0x293   : > { %v965_v46 = vadd.f32 %v1567_v20, %v964_v33 }
 0x295   : > { %v1055_v1 = vadd.f32 %v965_v46, %v657_v6 }
 0x297   : > { %1119 = vst.msk [vmem:[%s1581_s19 + $0x170] sm:$0xff] %vm743_vm1, %v1055_v1 }
 0x29a   : > { %v966_v15 = vpop.f32.mrf.mxu2 }
 0x29b   : > { %v967_v57 = vadd.f32 %v1567_v20, %v966_v15 }
 0x29d   : > { %v1056_v30 = vadd.f32 %v967_v57, %v658_v4 }
 0x29f   : > { %1120 = vst.msk [vmem:[%s1581_s19 + $0x178] sm:$0xff] %vm743_vm1, %v1056_v30 }
 0x2a2   : > { %v969_v55 = vpop.f32.mrf.mxu2 }
 0x2a3   : > { %v970_v27 = vadd.f32 %v1567_v20, %v969_v55 }
 0x2a5   : > { %v1057_v49 = vadd.f32 %v970_v27, %v659_v11 }
 0x2a7   : > { %1121 = vst.msk [vmem:[%s1581_s19 + $0x180] sm:$0xff] %vm743_vm1, %v1057_v49 }
 0x2aa   : > { %v971_v44 = vpop.f32.mrf.mxu2 }
 0x2ab   : > { %v972_v6 = vadd.f32 %v1567_v20, %v971_v44 }
 0x2ad   : > { %v1058_v35 = vadd.f32 %v972_v6, %v660_v56 }
 0x2af   : > { %1122 = vst.msk [vmem:[%s1581_s19 + $0x188] sm:$0xff] %vm743_vm1, %v1058_v35 }
 0x2b2   : > { %v974_v38 = vpop.f32.mrf.mxu2 }
 0x2b3   : > { %v975_v4 = vadd.f32 %v1567_v20, %v974_v38 }
 0x2b5   : > { %v1059_v0 = vadd.f32 %v975_v4, %v661_v2 }
 0x2b7   : > { %1123 = vst.msk [vmem:[%s1581_s19 + $0x190] sm:$0xff] %vm743_vm1, %v1059_v0 }
 0x2ba   : > { %v976_v42 = vpop.f32.mrf.mxu2 }
 0x2bb   : > { %v977_v11 = vadd.f32 %v1567_v20, %v976_v42 }
 0x2bd   : > { %v1060_v23 = vadd.f32 %v977_v11, %v662_v21 }
 0x2bf   : > { %1124 = vst.msk [vmem:[%s1581_s19 + $0x198] sm:$0xff] %vm743_vm1, %v1060_v23 }
 0x2c2   : > { %v979_v10 = vpop.f32.mrf.mxu2 }
 0x2c3   : > { %v980_v56 = vadd.f32 %v1567_v20, %v979_v10 }
 0x2c5   : > { %v1061_v48 = vadd.f32 %v980_v56, %v663_v25 }
 0x2c7   : > { %1125 = vst.msk [vmem:[%s1581_s19 + $0x1a0] sm:$0xff] %vm743_vm1, %v1061_v48 }
 0x2ca   : > { %v981_v54 = vpop.f32.mrf.mxu2 }
 0x2cb   : > { %v982_v2 = vadd.f32 %v1567_v20, %v981_v54 }
 0x2cd   : > { %v1062_v52 = vadd.f32 %v982_v2, %v664_v5 }
 0x2cf   : > { %1126 = vst.msk [vmem:[%s1581_s19 + $0x1a8] sm:$0xff] %vm743_vm1, %v1062_v52 }
 0x2d2   : > { %v984_v13 = vpop.f32.mrf.mxu2 }
 0x2d3   : > { %v985_v21 = vadd.f32 %v1567_v20, %v984_v13 }
 0x2d5   : > { %v1063_v29 = vadd.f32 %v985_v21, %v665_v41 }
 0x2d7   : > { %1127 = vst.msk [vmem:[%s1581_s19 + $0x1b0] sm:$0xff] %vm743_vm1, %v1063_v29 }
 0x2da   : > { %v986_v43 = vpop.f32.mrf.mxu2 }
 0x2db   : > { %v987_v25 = vadd.f32 %v1567_v20, %v986_v43 }
 0x2dd   : > { %v1064_v26 = vadd.f32 %v987_v25, %v666_v59 }
 0x2df   : > { %1128 = vst.msk [vmem:[%s1581_s19 + $0x1b8] sm:$0xff] %vm743_vm1, %v1064_v26 }
 0x2e2   : > { %v989_v19 = vpop.f32.mrf.mxu2 }
 0x2e3   : > { %v990_v5 = vadd.f32 %v1567_v20, %v989_v19 }
 0x2e5   : > { %v1065_v34 = vadd.f32 %v990_v5, %v667_v28 }
 0x2e7   : > { %1129 = vst.msk [vmem:[%s1581_s19 + $0x1c0] sm:$0xff] %vm743_vm1, %v1065_v34 }
 0x2ea   : > { %v991_v53 = vpop.f32.mrf.mxu2 }
 0x2eb   : > { %v992_v41 = vadd.f32 %v1567_v20, %v991_v53 }
 0x2ed   : > { %v1066_v32 = vadd.f32 %v992_v41, %v668_v62 }
 0x2ef   : > { %1130 = vst.msk [vmem:[%s1581_s19 + $0x1c8] sm:$0xff] %vm743_vm1, %v1066_v32 }
 0x2f2   : > { %v994_v16 = vpop.f32.mrf.mxu2 }
 0x2f3   : > { %v995_v59 = vadd.f32 %v1567_v20, %v994_v16 }
 0x2f5   : > { %v1067_v8 = vadd.f32 %v995_v59, %v669_v22 }
 0x2f7   : > { %1131 = vst.msk [vmem:[%s1581_s19 + $0x1d0] sm:$0xff] %vm743_vm1, %v1067_v8 }
 0x2fa   : > { %v996_v7 = vpop.f32.mrf.mxu2 }
 0x2fb   : > { %v997_v28 = vadd.f32 %v1567_v20, %v996_v7 }
 0x2fd   : > { %v1068_v18 = vadd.f32 %v997_v28, %v670_v47 }
 0x2ff   : > { %1132 = vst.msk [vmem:[%s1581_s19 + $0x1d8] sm:$0xff] %vm743_vm1, %v1068_v18 }
 0x302   : > { %v999_v12 = vpop.f32.mrf.mxu2 }
 0x303   : > { %v1000_v62 = vadd.f32 %v1567_v20, %v999_v12 }
 0x305   : > { %v1069_v24 = vadd.f32 %v1000_v62, %v671_v37 }
 0x307   : > { %1133 = vst.msk [vmem:[%s1581_s19 + $0x1e0] sm:$0xff] %vm743_vm1, %v1069_v24 }
 0x30a   : > { %v1001_v14 = vpop.f32.mrf.mxu2 }
 0x30b   : > { %v1002_v22 = vadd.f32 %v1567_v20, %v1001_v14 }
 0x30d   : > { %v1070_v60 = vadd.f32 %v1002_v22, %v672_v63 }
 0x30f   : > { %1134 = vst.msk [vmem:[%s1581_s19 + $0x1e8] sm:$0xff] %vm743_vm1, %v1070_v60 }
 0x312   : > { %v1004_v50 = vpop.f32.mrf.mxu2 }
 0x313   : > { %v1005_v47 = vadd.f32 %v1567_v20, %v1004_v50 }
 0x315   : > { %v1071_v36 = vadd.f32 %v1005_v47, %v673_v45 }
 0x317   : > { %1135 = vst.msk [vmem:[%s1581_s19 + $0x1f0] sm:$0xff] %vm743_vm1, %v1071_v36 }
 0x31a   : > { %v1006_v51 = vpop.f32.mrf.mxu2 }
 0x31b   : > { %v1007_v37 = vadd.f32 %v1567_v20, %v1006_v51 }
 0x31d   : > { %v1072_v17 = vadd.f32 %v1007_v37, %v674_v58 }
 0x31f   : > { %1136 = vst.msk [vmem:[%s1581_s19 + $0x1f8] sm:$0xff] %vm743_vm1, %v1072_v17 }
 0x320 PF: > { %s15_s18 = sadd.s32 1, %s1321_s18  }
 0x321   : > { %p12_p4 = scmp.ge.s32.totalorder %s15_s18, 4  }
 0x323   :  { %14 = sbr.rel (!%p12_p4) target bundleno = 1 (0x1), region = 70 }

</bundles_post_ra>
